<compile_context>
chip_gen: v7x
topology: tpu7x:2x2x1
jax: 0.10.0
libtpu: 0.0.40
codegen_flags: <defaults>
</compile_context>

<pallas_src>
import functools

import jax
import jax.numpy as jnp
from jax.experimental import pallas as pl
from jax.experimental.pallas import tpu as pltpu


# ----------------------------------------------------------------------------
# small helpers
# ----------------------------------------------------------------------------
def _round_up(v, m):
    return ((v + m - 1) // m) * m


def _cdiv(a, b):
    return -(-a // b)


def _vmem_capacity_bytes():
    try:
        return int(pltpu.get_tpu_info().vmem_capacity_bytes)
    except Exception:
        return 64 * 1024 * 1024  # conservative fallback (v7x per-TensorCore VMEM)


def _const_spec(shape):
    """BlockSpec for a grid-constant (weight / bias) operand.

    Constant index_map -> DMA'd once and revisited; Buffered(1) drops the
    useless second buffer (VMEM headroom, mostly relevant on v7x's 64 MiB).
    Falls back to a plain spec if this jax version lacks pipeline_mode.
    """
    idx = lambda n, m: (0, 0)
    try:
        return pl.BlockSpec(shape, idx, pipeline_mode=pl.Buffered(1))
    except (TypeError, AttributeError):
        return pl.BlockSpec(shape, idx)


# ----------------------------------------------------------------------------
# Pallas kernel: channel-major attention gate over a tile of spatial locations
# ----------------------------------------------------------------------------
def _attention_gate_kernel(g_ref, x_ref, wg_ref, wx_ref, b_ref, wp_ref,
                           bp_ref, o_ref):
    g = g_ref[0]                                   # (F_g, TM), io dtype
    x = x_ref[0]                                   # (F_l, TM), io dtype

    # 1x1 convs as channel-major matmuls: (F_int, C_in) @ (C_in, TM), f32 acc.
    # (BN already folded into wg/wx; bg+bx pre-summed into b_ref.)
    g1 = jnp.dot(wg_ref[...], g, preferred_element_type=jnp.float32)
    x1 = jnp.dot(wx_ref[...], x, preferred_element_type=jnp.float32)
    a = jnp.maximum(g1 + x1 + b_ref[...], 0.0)     # (F_int, TM)

    # psi logit: VPU multiply + sublane (XLU) reduce — keeps the 1-column
    # projection off the MXU and avoids an extra MXU drain per tile.
    logit = jnp.sum(a * wp_ref[...], axis=0, keepdims=True) + bp_ref[0]
    psi = jax.nn.sigmoid(logit)                    # (1, TM)

    # Gated output: x * psi (broadcast over channels), full-width lane store.
    o_ref[0] = (x.astype(jnp.float32) * psi).astype(o_ref.dtype)


def _fold_bn(w, b, gamma, beta, mean, var, eps=1e-5):
    """Fold eval-mode BatchNorm into a 1x1-conv weight (C_out, C_in) + bias."""
    scale = gamma / jnp.sqrt(var + eps)
    w_f = w * scale[:, None]
    b_f = (b - mean) * scale + beta
    return w_f, b_f


# ----------------------------------------------------------------------------
# wrapper
# ----------------------------------------------------------------------------
@functools.partial(jax.jit, static_argnames=("tm", "io_dtype", "out_dtype"))
def attention_gate(g, x, params, *, tm=1024, io_dtype=jnp.bfloat16,
                   out_dtype=None):
    """g, x: NCHW. Returns x * psi (NCHW) in `out_dtype` (default: io_dtype)."""
    N, F_g, H, W = g.shape
    Nx, F_l, Hx, Wx = x.shape
    # TODO(synk): bilinear F.interpolate branch (g/x spatial mismatch) not implemented.
    assert (N, H, W) == (Nx, Hx, Wx), "g/x must share batch and spatial dims"
    HW = H * W
    if out_dtype is None:
        out_dtype = io_dtype

    # ---- fold eval-mode BatchNorm into the three 1x1 convs (in f32) --------
    wg_f, bg_f = _fold_bn(params["wg"], params["bg"], params["gamma_g"],
                          params["beta_g"], params["mean_g"], params["var_g"])
    wx_f, bx_f = _fold_bn(params["wx"], params["bx"], params["gamma_x"],
                          params["beta_x"], params["mean_x"], params["var_x"])
    wp_f, bp_f = _fold_bn(params["wp"], params["bp"], params["gamma_p"],
                          params["beta_p"], params["mean_p"], params["var_p"])
    F_int = wg_f.shape[0]

    # Pad F_int to the sublane packing (8 for f32, 16 for 16-bit weights) so
    # the (F_int, TM) intermediates and weight tiles stay vreg-dense.
    io_b = jnp.dtype(io_dtype).itemsize
    out_b = jnp.dtype(out_dtype).itemsize
    F_int_p = _round_up(F_int, 16 if io_b == 2 else 8)
    if F_int_p != F_int:
        pad_r = F_int_p - F_int
        wg_f = jnp.pad(wg_f, ((0, pad_r), (0, 0)))
        wx_f = jnp.pad(wx_f, ((0, pad_r), (0, 0)))
        bg_f = jnp.pad(bg_f, (0, pad_r))
        bx_f = jnp.pad(bx_f, (0, pad_r))
        wp_f = jnp.pad(wp_f, ((0, 0), (0, pad_r)))

    wg_io = wg_f.astype(io_dtype)                       # matmul operands in io dtype
    wx_io = wx_f.astype(io_dtype)                       # (bf16 -> single-pass MXU)
    b_gx = (bg_f + bx_f).reshape(F_int_p, 1).astype(jnp.float32)
    wp_col = wp_f.reshape(F_int_p, 1).astype(jnp.float32)
    bp_s = bp_f.reshape(1).astype(jnp.float32)          # scalar psi bias -> SMEM

    # ---- lane-tile sizing from the per-generation VMEM budget --------------
    vmem_cap = _vmem_capacity_bytes()        # ~128 MiB v5e/v6e, ~64 MiB v7x
    vmem_budget = (3 * vmem_cap) // 4        # leave headroom vs physical VMEM
    per_lane = (2 * (F_g * io_b + F_l * io_b + F_l * out_b)  # double-buffered g/x/out
                + 3 * F_int_p * 4)                           # f32 g1/x1/a intermediates
    fixed = 2 * (F_int_p * (F_g + F_l) * io_b + 2 * F_int_p * 4) + (1 << 20)

    tm_eff = max(128, min(_round_up(tm, 128), _round_up(HW, 128)))
    while tm_eff > 128 and per_lane * tm_eff + fixed > vmem_budget:
        tm_eff -= 128
    # Guarantee >=2 grid programs so a 2-TensorCore chip (v7x) can shard the
    # grid across cores (harmless on single-TC v5e/v6e).
    while tm_eff > 128 and N * _cdiv(HW, tm_eff) < 2:
        tm_eff = max(128, _round_up(tm_eff // 2, 128))

    m_tiles = _cdiv(HW, tm_eff)
    HW_pad = m_tiles * tm_eff

    # Channel-major operands (free contiguous reshape; no NCHW<->NHWC transpose
    # touches HBM). Pad the spatial tail instead of shrinking the tile.
    g3 = g.reshape(N, F_g, HW).astype(io_dtype)
    x3 = x.reshape(N, F_l, HW).astype(io_dtype)
    if HW_pad != HW:
        g3 = jnp.pad(g3, ((0, 0), (0, 0), (0, HW_pad - HW)))
        x3 = jnp.pad(x3, ((0, 0), (0, 0), (0, HW_pad - HW)))

    # Donate x3's HBM buffer to the output when dtypes match: each x tile is
    # fully consumed into VMEM before its output tile is written back.
    aliases = {1: 0} if jnp.dtype(out_dtype) == jnp.dtype(io_dtype) else {}

    out = pl.pallas_call(
        _attention_gate_kernel,
        out_shape=jax.ShapeDtypeStruct((N, F_l, HW_pad), out_dtype),
        grid_spec=pltpu.PrefetchScalarGridSpec(
            num_scalar_prefetch=0,
            grid=(N, m_tiles),
            in_specs=[
                pl.BlockSpec((1, F_g, tm_eff), lambda n, m: (n, 0, m)),   # g
                pl.BlockSpec((1, F_l, tm_eff), lambda n, m: (n, 0, m)),   # x
                _const_spec((F_int_p, F_g)),                              # wg (BN-folded)
                _const_spec((F_int_p, F_l)),                              # wx (BN-folded)
                _const_spec((F_int_p, 1)),                                # bg + bx column
                _const_spec((F_int_p, 1)),                                # wp column
                pl.BlockSpec(memory_space=pltpu.MemorySpace.SMEM),        # bp scalar
            ],
            out_specs=pl.BlockSpec((1, F_l, tm_eff), lambda n, m: (n, 0, m)),
        ),
        compiler_params=pltpu.CompilerParams(
            dimension_semantics=("parallel", "parallel"),
            vmem_limit_bytes=int(vmem_budget),
        ),
        input_output_aliases=aliases,
    )(g3, x3, wg_io, wx_io, b_gx, wp_col, bp_s)

    if HW_pad != HW:
        out = out[:, :, :HW]
    return out.reshape(N, F_l, H, W)


# ----------------------------------------------------------------------------
# parameters + pure-JAX reference (eval-mode forward) for the sanity check
# ----------------------------------------------------------------------------
def init_params(key, F_g, F_l, F_int):
    ks = jax.random.split(key, 6)
    return {
        # Conv2d weights: PyTorch (C_out, C_in, 1, 1) stored as (C_out, C_in)
        "wg": jax.random.normal(ks[0], (F_int, F_g), jnp.float32) * 0.1,
        "bg": jax.random.normal(ks[1], (F_int,), jnp.float32) * 0.1,
        "wx": jax.random.normal(ks[2], (F_int, F_l), jnp.float32) * 0.1,
        "bx": jax.random.normal(ks[3], (F_int,), jnp.float32) * 0.1,
        "wp": jax.random.normal(ks[4], (1, F_int), jnp.float32) * 0.1,
        "bp": jax.random.normal(ks[5], (1,), jnp.float32) * 0.1,
        # BatchNorm (eval-mode) params, deterministic init
        "gamma_g": jnp.ones((F_int,), jnp.float32),
        "beta_g": jnp.zeros((F_int,), jnp.float32),
        "mean_g": jnp.zeros((F_int,), jnp.float32),
        "var_g": jnp.ones((F_int,), jnp.float32),
        "gamma_x": jnp.ones((F_int,), jnp.float32),
        "beta_x": jnp.zeros((F_int,), jnp.float32),
        "mean_x": jnp.zeros((F_int,), jnp.float32),
        "var_x": jnp.ones((F_int,), jnp.float32),
        "gamma_p": jnp.ones((1,), jnp.float32),
        "beta_p": jnp.zeros((1,), jnp.float32),
        "mean_p": jnp.zeros((1,), jnp.float32),
        "var_p": jnp.ones((1,), jnp.float32),
    }


def _reference(g, x, params):
    """Pure-JAX eval-mode reference (exact f32 matmuls)."""
    hp = jax.lax.Precision.HIGHEST

    def conv_bn(a, w, b, gamma, beta, mean, var, eps=1e-5):
        y = jnp.einsum("nchw,oc->nohw", a, w, precision=hp) + b[None, :, None, None]
        return ((y - mean[None, :, None, None])
                / jnp.sqrt(var[None, :, None, None] + eps)
                * gamma[None, :, None, None] + beta[None, :, None, None])

    g1 = conv_bn(g, params["wg"], params["bg"], params["gamma_g"],
                 params["beta_g"], params["mean_g"], params["var_g"])
    x1 = conv_bn(x, params["wx"], params["bx"], params["gamma_x"],
                 params["beta_x"], params["mean_x"], params["var_x"])
    a = jnp.maximum(g1 + x1, 0.0)
    psi = conv_bn(a, params["wp"], params["bp"], params["gamma_p"],
                  params["beta_p"], params["mean_p"], params["var_p"])
    psi = jax.nn.sigmoid(psi)
    return x * psi


if __name__ == "__main__":
    N, F_g, F_l, F_int, H, W = 2, 4, 4, 8, 16, 16
    key = jax.random.PRNGKey(0)
    k_g, k_x, k_p = jax.random.split(key, 3)

    g = jax.random.normal(k_g, (N, F_g, H, W), jnp.float32)
    x = jax.random.normal(k_x, (N, F_l, H, W), jnp.float32)
    params = init_params(k_p, F_g, F_l, F_int)

    ref = _reference(g, x, params)

    # f32-streamed path (reference-precision mode).
    out_f32 = jax.block_until_ready(
        attention_gate(g, x, params, io_dtype=jnp.float32))
    assert out_f32.shape == x.shape and out_f32.dtype == jnp.float32
    assert jnp.allclose(out_f32, ref, atol=5e-3, rtol=5e-3), \
        "f32 path mismatch vs reference"

    # Default fast path: bf16-streamed g/x/output (kernel is HBM-bound, so the
    # narrower dtype is the dominant perf lever); looser tolerance.
    out_bf16 = jax.block_until_ready(attention_gate(g, x, params))
    assert out_bf16.shape == x.shape and out_bf16.dtype == jnp.bfloat16
    assert jnp.allclose(out_bf16.astype(jnp.float32), ref, atol=3e-2, rtol=3e-2), \
        "bf16 path mismatch vs reference"

    print("KERNEL_OK")
</pallas_src>

<mosaic_0001>
module attributes {stable_mosaic.version = 11 : i64} {
  func.func @_attention_gate_kernel(%arg0: i32, %arg1: i32, %arg2: memref<1x4x256xf32, #tpu.memory_space<vmem>>, %arg3: memref<1x4x256xf32, #tpu.memory_space<vmem>>, %arg4: memref<8x4xf32, #tpu.memory_space<vmem>>, %arg5: memref<8x4xf32, #tpu.memory_space<vmem>>, %arg6: memref<8x1xf32, #tpu.memory_space<vmem>>, %arg7: memref<8x1xf32, #tpu.memory_space<vmem>>, %arg8: memref<1xf32, #tpu.memory_space<smem>>, %arg9: memref<1x4x256xf32, #tpu.memory_space<vmem>>) attributes {dimension_semantics = [#tpu.dimension_semantics<parallel>, #tpu.dimension_semantics<parallel>], iteration_bounds = array<i64: 2, 1>, scalar_prefetch = 0 : i64, scratch_operands = 0 : i64, tpu.core_type = #tpu.core_type<tc>, window_params = [{transform_indices = @transform_0, window_bounds = array<i64: 1, 4, 256>}, {transform_indices = @transform_1, window_bounds = array<i64: 1, 4, 256>}, {pipeline_mode = #tpu.pipeline_mode<synchronous>, transform_indices = @transform_2, window_bounds = array<i64: 8, 4>}, {pipeline_mode = #tpu.pipeline_mode<synchronous>, transform_indices = @transform_3, window_bounds = array<i64: 8, 4>}, {pipeline_mode = #tpu.pipeline_mode<synchronous>, transform_indices = @transform_4, window_bounds = array<i64: 8, 1>}, {pipeline_mode = #tpu.pipeline_mode<synchronous>, transform_indices = @transform_5, window_bounds = array<i64: 8, 1>}, {transform_indices = @transform_6, window_bounds = array<i64: 1>}, {transform_indices = @transform_7, window_bounds = array<i64: 1, 4, 256>}]} {
    %c0 = arith.constant 0 : index
    %c0_0 = arith.constant 0 : index
    %c0_1 = arith.constant 0 : index
    %0 = vector.load %arg2[%c0, %c0_0, %c0_1] : memref<1x4x256xf32, #tpu.memory_space<vmem>>, vector<1x4x256xf32>
    %1 = vector.shape_cast %0 : vector<1x4x256xf32> to vector<4x256xf32>
    %c0_2 = arith.constant 0 : index
    %c0_3 = arith.constant 0 : index
    %c0_4 = arith.constant 0 : index
    %2 = vector.load %arg3[%c0_2, %c0_3, %c0_4] : memref<1x4x256xf32, #tpu.memory_space<vmem>>, vector<1x4x256xf32>
    %3 = vector.shape_cast %2 : vector<1x4x256xf32> to vector<4x256xf32>
    %c0_5 = arith.constant 0 : index
    %c0_6 = arith.constant 0 : index
    %4 = vector.load %arg4[%c0_5, %c0_6] : memref<8x4xf32, #tpu.memory_space<vmem>>, vector<8x4xf32>
    %cst = arith.constant dense<0.000000e+00> : vector<8x256xf32>
    %5 = tpu.matmul %4, %1, %cst {dimension_numbers = #tpu.dot_dimension_numbers<[1], [0], [0], [1], [0, 0, 1, 1], [], []>} : vector<8x4xf32>, vector<4x256xf32>, vector<8x256xf32> -> vector<8x256xf32>
    %c0_7 = arith.constant 0 : index
    %c0_8 = arith.constant 0 : index
    %6 = vector.load %arg5[%c0_7, %c0_8] : memref<8x4xf32, #tpu.memory_space<vmem>>, vector<8x4xf32>
    %cst_9 = arith.constant dense<0.000000e+00> : vector<8x256xf32>
    %7 = tpu.matmul %6, %3, %cst_9 {dimension_numbers = #tpu.dot_dimension_numbers<[1], [0], [0], [1], [0, 0, 1, 1], [], []>} : vector<8x4xf32>, vector<4x256xf32>, vector<8x256xf32> -> vector<8x256xf32>
    %8 = arith.addf %5, %7 : vector<8x256xf32>
    %c0_10 = arith.constant 0 : index
    %c0_11 = arith.constant 0 : index
    %9 = vector.load %arg6[%c0_10, %c0_11] : memref<8x1xf32, #tpu.memory_space<vmem>>, vector<8x1xf32>
    %10 = vector.broadcast %9 : vector<8x1xf32> to vector<8x256xf32>
    %11 = arith.addf %8, %10 : vector<8x256xf32>
    %cst_12 = arith.constant 0.000000e+00 : f32
    %12 = vector.broadcast %cst_12 : f32 to vector<8x256xf32>
    %13 = arith.maximumf %11, %12 : vector<8x256xf32>
    %c0_13 = arith.constant 0 : index
    %c0_14 = arith.constant 0 : index
    %14 = vector.load %arg7[%c0_13, %c0_14] : memref<8x1xf32, #tpu.memory_space<vmem>>, vector<8x1xf32>
    %15 = vector.broadcast %14 : vector<8x1xf32> to vector<8x256xf32>
    %16 = arith.mulf %13, %15 : vector<8x256xf32>
    %cst_15 = arith.constant dense<0.000000e+00> : vector<256xf32>
    %17 = vector.multi_reduction <add>, %16, %cst_15 [0] : vector<8x256xf32> to vector<256xf32>
    %18 = vector.shape_cast %17 : vector<256xf32> to vector<1x256xf32>
    %c0_16 = arith.constant 0 : index
    %19 = memref.load %arg8[%c0_16] : memref<1xf32, #tpu.memory_space<smem>>
    %20 = vector.broadcast %19 : f32 to vector<1x256xf32>
    %21 = arith.addf %18, %20 : vector<1x256xf32>
    %22 = arith.negf %21 : vector<1x256xf32>
    %23 = math.exp %22 : vector<1x256xf32>
    %cst_17 = arith.constant 1.000000e+00 : f32
    %24 = vector.broadcast %cst_17 : f32 to vector<1x256xf32>
    %25 = arith.addf %24, %23 : vector<1x256xf32>
    %26 = arith.divf %24, %25 : vector<1x256xf32>
    %27 = vector.broadcast %26 : vector<1x256xf32> to vector<4x256xf32>
    %28 = arith.mulf %3, %27 : vector<4x256xf32>
    %c0_18 = arith.constant 0 : index
    %c0_19 = arith.constant 0 : index
    %c0_20 = arith.constant 0 : index
    %29 = vector.load %arg9[%c0_18, %c0_19, %c0_20] : memref<1x4x256xf32, #tpu.memory_space<vmem>>, vector<1x4x256xf32>
    %30 = vector.shape_cast %29 : vector<1x4x256xf32> to vector<4x256xf32>
    %31 = vector.shape_cast %28 : vector<4x256xf32> to vector<1x4x256xf32>
    tpu.vector_store %arg9[%c0_18, %c0_19, %c0_20], %31 {strides = array<i32>} : memref<1x4x256xf32, #tpu.memory_space<vmem>>, vector<1x4x256xf32>,
    return
  }
  func.func @transform_0(%arg0: i32, %arg1: i32) -> (i32, i32, i32) {
    %c0_i32 = arith.constant 0 : i32
    %c0_i32_0 = arith.constant 0 : i32
    return %arg0, %c0_i32, %arg1 : i32, i32, i32
  }
  func.func @transform_1(%arg0: i32, %arg1: i32) -> (i32, i32, i32) {
    %c0_i32 = arith.constant 0 : i32
    %c0_i32_0 = arith.constant 0 : i32
    return %arg0, %c0_i32, %arg1 : i32, i32, i32
  }
  func.func @transform_2(%arg0: i32, %arg1: i32) -> (i32, i32) {
    %c0_i32 = arith.constant 0 : i32
    %c0_i32_0 = arith.constant 0 : i32
    %c0_i32_1 = arith.constant 0 : i32
    return %c0_i32, %c0_i32_0 : i32, i32
  }
  func.func @transform_3(%arg0: i32, %arg1: i32) -> (i32, i32) {
    %c0_i32 = arith.constant 0 : i32
    %c0_i32_0 = arith.constant 0 : i32
    %c0_i32_1 = arith.constant 0 : i32
    return %c0_i32, %c0_i32_0 : i32, i32
  }
  func.func @transform_4(%arg0: i32, %arg1: i32) -> (i32, i32) {
    %c0_i32 = arith.constant 0 : i32
    %c0_i32_0 = arith.constant 0 : i32
    %c0_i32_1 = arith.constant 0 : i32
    return %c0_i32, %c0_i32_0 : i32, i32
  }
  func.func @transform_5(%arg0: i32, %arg1: i32) -> (i32, i32) {
    %c0_i32 = arith.constant 0 : i32
    %c0_i32_0 = arith.constant 0 : i32
    %c0_i32_1 = arith.constant 0 : i32
    return %c0_i32, %c0_i32_0 : i32, i32
  }
  func.func @transform_6(%arg0: i32, %arg1: i32) -> i32 {
    %c0_i32 = arith.constant 0 : i32
    %c0_i32_0 = arith.constant 0 : i32
    return %c0_i32 : i32
  }
  func.func @transform_7(%arg0: i32, %arg1: i32) -> (i32, i32, i32) {
    %c0_i32 = arith.constant 0 : i32
    %c0_i32_0 = arith.constant 0 : i32
    return %arg0, %c0_i32, %arg1 : i32, i32, i32
  }
}

</mosaic_0001>

<bundles_post_ra>
// kernel: attention_gate.1
= control target key start
LH: loop header
LB: loop body
LE: loop exit
PB: predicated region body
PF: predicated region fallthrough
CT: control target
= control target key end

     0   :  { %s810_s26 = smov 0   ;;  %s812_s27 = smov 0   ;;  %s863_s0 = inlined_call_operand.vmem [shape: f32[2,4,256], index: 0, kind: input, shape index: {}]   ;;  %s864_s1 = inlined_call_operand.vmem [shape: f32[2,4,256], index: 1, kind: input, shape index: {}, may-alias: {1,7}]   ;;  %s865_s2 = inlined_call_operand.vmem [shape: f32[8,4], index: 2, kind: input, shape index: {}]   ;;  %s866_s3 = inlined_call_operand.vmem [shape: f32[8,4], index: 3, kind: input, shape index: {}]   ;;  %s867_s4 = inlined_call_operand.vmem [shape: f32[8,1], index: 4, kind: input, shape index: {}]   ;;  %s868_s5 = inlined_call_operand.vmem [shape: f32[8,1], index: 5, kind: input, shape index: {}]   ;;  %s869_s6 = inlined_call_operand.<no memory space> [shape: f32[1], index: 6, kind: input, shape index: {}]   ;;  %s870_s7 = inlined_call_operand.vmem [shape: f32[2,4,256], index: 7, kind: output, shape index: {}, may-alias: {1,7}]  }
   0x1   :  { %12 = sst [smem:[#allocation2]] %s869_s6  ;;  %s814_s28 = smov 0  }
   0x2 LB: > { %s30_s6 = sadd.s32 1, %s759_s27  ;;  %p682_p0 = scmp.ge.s32.totalorder %s763_s28, 1  ;;  %s763_s28 = sphi %s814_s28, %s18_s28   ;;  %s759_s27 = sphi %s812_s27, %s872_s27   ;;  %s755_s26 = sphi %s810_s26, %s871_s26  }
   0x3   : > { %p32_p1 = scmp.ge.s32.totalorder %s30_s6, 2  ;;  %p276_p2 = scmp.lt.s32.totalorder %s763_s28, 3 }
   0x5   : > { %s874_s6 = smov (%p32_p1, %s30_s6), 0  ;;  %p277_p3 = pnand %p682_p0, %p276_p2 }
   0x6   : > { %p326_p4 = scmp.lt.s32.totalorder (!%p277_p3), %s755_s26, 1  ;;  %v765_v0 = vmov (!%p277_p3), 0.0   ;;  %v521_v1 = vld [vmem:[%s867_s4] sm:$0xff] (!%p277_p3)  ;;  %v766_v2 = vmov (!%p277_p3), 0   ;;  %vm365_vm0 = vcmask (!%p277_p3), 1043456   ;;  %vm361_vm1 = vcmask (!%p277_p3), 31744  }
   0x7   : > { %280 = sbr.rel (%p277_p3) target bundleno = 289 (0x121), region = 48  ;;  %434 = vmatprep.mubr.f32.mxu1 (!%p277_p3), %v765_v0  ;;  %514 = vmatprep.mubr.f32.mxu0 (!%p277_p3), %v765_v0  ;;  %v531_v3 = vld [vmem:[%s868_s5] sm:$0xff] (!%p277_p3)  ;;  %s551_s21 = sld [smem:[#allocation2]] (!%p277_p3) }
   0x8   : > { %730 = vset.pattern.permute.xlu0 (!%p277_p3), %v766_v2  ;;  %v358_v8 = vld [vmem:[%s866_s3] sm:$0xff] (!%p277_p3) }
   0x9   : > { %524 = vperm.xlu0 (!%p277_p3), %730, %v521_v1   ;;  %v357_v9 = vld [vmem:[%s865_s2] sm:$0xff] (!%p277_p3) }
   0xd   : > { %534 = vperm.xlu0 (!%p277_p3), %730, %v531_v3   ;;  %v552_v33 = vstv (!%p277_p3), %s551_s21 }
   0xe   : > { %s876_s26 = smov (!%p326_p4, %s755_s26), 1 }
   0xf   : > { %s831_s8 = sshll.u32 %s876_s26, 3 }
  0x10   : > { %s343_s13 = scalar_lea.vmem %s864_s1, %s831_s8  ;;  %s333_s16 = scalar_lea.vmem %s863_s0, %s831_s8 }
  0x11   : > { %v356_v4 = vld [vmem:[%s343_s13] sm:$0xff]  ;;  %s353_s24 = scalar_lea.vmem %s870_s7, %s831_s8 }
  0x12   : > { %v360_v5 = vcombine.high %v356_v4, %v356_v4  ;;  %v355_v6 = vld [vmem:[%s333_s16] sm:$0xff] }
  0x13   : > { %v442_v7 = vcombine.high %v355_v6, %v355_v6 }
  0x14   : > { %689 = vmatprep.subr.msk.mxu1 %vm365_vm0, %v360_v5 }
  0x15   : > { %692 = vmatprep.subr.msk.mxu0 %vm365_vm0, %v442_v7  ;;  %690 = vmatpush1.msk.msra.mxu1 %vm365_vm0, %v356_v4 }
  0x16   : > { %693 = vmatpush1.msk.msra.mxu0 %vm365_vm0, %v355_v6  ;;  %691 = vmatmul.mubr.msk.f32.vlgmr.msra.gmra.mrb[0].mxu1 %vm361_vm1, %v358_v8 }
  0x17   : > { %694 = vmatmul.mubr.msk.f32.vlgmr.msra.gmra.mrb[0].mxu0 %vm361_vm1, %v357_v9 }
  0x88   : > { %v525_v10 = vpop.permute.xlu0 %524 }
  0x8c   : > { %v535_v20 = vpop.permute.xlu0 %534 }
  0xe9   : > { %v436_v11 = vpop.f32.mrb[0].mxu1 }
  0xea   : > { %v516_v12 = vpop.f32.mrb[0].mxu0  ;;  %v438_v13 = vpop.f32.mrb[1].mxu1 }
  0xeb   : > { %v517_v14 = vadd.f32 %v516_v12, %v436_v11  ;;  %v518_v15 = vpop.f32.mrb[1].mxu0 }
  0xec   : > { %v519_v16 = vadd.f32 %v518_v15, %v438_v13 }
  0xed   : > { %v527_v17 = vadd.f32 %v525_v10, %v517_v14 }
  0xee   : > { %v528_v18 = vadd.f32 %v525_v10, %v519_v16 }
  0xef   : > { %v529_v19 = vmax.f32 %v527_v17, 0.0 }
  0xf0   : > { %v530_v21 = vmax.f32 %v528_v18, 0.0 }
  0xf1   : > { %v537_v22 = vmul.f32 %v535_v20, %v529_v19 }
  0xf2   : > { %v538_v23 = vmul.f32 %v535_v20, %v530_v21 }
  0xf3   : > { %v539_v24 = vrot.slane %v537_v22, 4 }
  0xf4   : > { %v545_v25 = vrot.slane %v538_v23, 4 }
  0xf5   : > { %v540_v26 = vadd.f32 %v539_v24, %v537_v22 }
  0xf6   : > { %v546_v27 = vadd.f32 %v545_v25, %v538_v23 }
  0xf7   : > { %v541_v28 = vrot.slane %v540_v26, 2 }
  0xf8   : > { %v547_v29 = vrot.slane %v546_v27, 2 }
  0xf9   : > { %v542_v30 = vadd.f32 %v541_v28, %v540_v26 }
  0xfa   : > { %v548_v31 = vadd.f32 %v547_v29, %v546_v27 }
  0xfb   : > { %v543_v32 = vrot.slane %v542_v30, 1 }
  0xfc   : > { %v549_v34 = vrot.slane %v548_v31, 1 }
  0xfd   : > { %v544_v35 = vadd.f32 %v543_v32, %v542_v30 }
  0xfe   : > { %v550_v36 = vadd.f32 %v549_v34, %v548_v31 }
  0xff   : > { %v553_v37 = vadd.f32 %v552_v33, %v544_v35 }
 0x100   : > { %v554_v38 = vadd.f32 %v552_v33, %v550_v36 }
 0x101   : > { %v695_v39 = vmul.f32 -1.442695, %v553_v37 }
 0x102   : > { %v696_v40 = vmul.f32 -1.442695, %v554_v38 }
 0x103   : > { %733 = vpow2.f32 %v695_v39 }
 0x104   : > { %735 = vpow2.f32 %v696_v40 }
 0x10d   : > { %v734_v41 = vpop.eup %733 }
 0x10e   : > { %v736_v42 = vpop.eup %735  ;;  %v561_v43 = vadd.f32 1.0, %v734_v41 }
 0x10f   : > { %v562_v44 = vadd.f32 1.0, %v736_v42 }
 0x110   : > { %737 = vrcp.f32 %v561_v43 }
 0x111   : > { %739 = vrcp.f32 %v562_v44 }
 0x11a   : > { %v738_v45 = vpop.eup %737 }
 0x11b   : > { %v740_v46 = vpop.eup %739 }
 0x11c   : > { %v569_v47 = vcombine.low %v738_v45, %v740_v46 }
 0x11e   : > { %v571_v48 = vmul.f32 %v569_v47, %v356_v4 }
 0x120   : > { %572 = vst [vmem:[%s353_s24] sm:$0xff] %v571_v48 }
 0x121 PF: > { %s18_s28 = sadd.s32 1, %s763_s28   ;;  %s871_s26 = smov %s759_s27 }
 0x122   : > { %p15_p5 = scmp.ge.s32.totalorder %s18_s28, 4   ;;  %s872_s27 = smov %s874_s6 }
 0x124   :  { %17 = sbr.rel (!%p15_p5) target bundleno = 2 (0x2), region = 81 }

</bundles_post_ra>
